<compile_context>
chip_gen: v7x
topology: tpu7x:2x2x1
jax: 0.10.0
libtpu: 0.0.40
codegen_flags: <defaults>
</compile_context>

<pallas_src>
import functools

import jax
import jax.numpy as jnp
from jax.experimental import pallas as pl
from jax.experimental.pallas import tpu as pltpu


def se_block_kernel(x_ref, w1t_ref, w2t_ref, o_ref, *, inv_hw):
    """One grid step processes TB batch elements; x_ref is (TB, C, HW)."""
    x = x_ref[...]                                             # input dtype

    # --- squeeze: global average pool over HW (f32 accumulation) ---
    pooled = jnp.sum(x, axis=-1, dtype=jnp.float32) * inv_hw   # (TB, C)

    # --- excitation: fc1 (no bias) + ReLU, fc2 (no bias) + Sigmoid, on MXU ---
    # Weights are already f32 with the hidden dim zero-padded: the padded
    # columns of w1t give y1 = relu(0) = 0 and the padded rows of w2t are
    # zero, so they contribute nothing to the gate.
    y1 = jnp.maximum(
        jnp.dot(pooled, w1t_ref[...], preferred_element_type=jnp.float32),
        0.0)                                                   # (TB, Ch_pad)
    gate = jax.nn.sigmoid(
        jnp.dot(y1, w2t_ref[...], preferred_element_type=jnp.float32))  # (TB, C)

    # --- scale: broadcast per-channel gate over HW, store in input dtype ---
    o_ref[...] = x * gate.astype(x.dtype)[:, :, None]


def _tpu_hw_params():
    """Physical VMEM capacity and TensorCores-per-chip (best effort)."""
    vmem_cap = 64 * 1024 * 1024      # conservative default (v7x physical VMEM)
    num_cores = 1
    try:
        info = pltpu.get_tpu_info()
        vmem_cap = int(getattr(info, "vmem_capacity_bytes", vmem_cap))
        for name in ("tensorcores_per_chip", "num_tensorcores", "num_cores"):
            if hasattr(info, name):
                num_cores = int(getattr(info, name))
                break
    except Exception:
        pass
    try:
        kind = jax.devices()[0].device_kind.lower()
        if "v7" in kind:             # v7x has 2 TensorCores per chip
            num_cores = max(num_cores, 2)
    except Exception:
        pass
    return vmem_cap, max(1, num_cores)


def _pick_tb(batch, bytes_per_b, target_bytes, num_cores):
    """Largest divisor of `batch` whose block fits the byte target.

    Divisor -> no batch padding and no ragged tail block.  On multi-core
    chips, prefer a step count that splits evenly across the cores.
    """
    divisors = [d for d in range(1, batch + 1) if batch % d == 0]
    feasible = [d for d in divisors if d * bytes_per_b <= target_bytes] or [1]
    if num_cores > 1:
        even = [d for d in feasible if (batch // d) % num_cores == 0]
        if even:
            return max(even)
        multi = [d for d in feasible if (batch // d) >= num_cores]
        if multi:
            return max(multi)
    return max(feasible)


def se_block(x, w1, w2):
    """x: (B, C, H, W); w1: (C//r, C); w2: (C, C//r). Mirrors SEBlock.forward."""
    B, C, H, W = x.shape
    HW = H * W
    Ch = w1.shape[0]
    itemsize = jnp.dtype(x.dtype).itemsize

    vmem_cap, num_cores = _tpu_hw_params()

    # Block sizing: 4-16 MiB blocks (bounded by physical VMEM / 8 so that the
    # double-buffered in+out budget of ~4x block stays well within VMEM).
    target_bytes = int(min(16 << 20, max(4 << 20, vmem_cap // 8)))
    bytes_per_b = C * HW * itemsize
    tb = _pick_tb(B, bytes_per_b, target_bytes, num_cores)
    steps = B // tb                  # exact: tb divides B -> no padding

    # Single (B, C, HW) layout (reshape is metadata-only); never transpose x.
    x3 = x.reshape(B, C, HW)
    block = (tb, C, HW)

    # Weights: pre-transpose, pre-cast f32, zero-pad hidden dim to >= 128.
    ch_pad = max(128, pl.cdiv(Ch, 128) * 128)
    w1t = jnp.zeros((C, ch_pad), jnp.float32).at[:, :Ch].set(
        jnp.transpose(w1).astype(jnp.float32))                 # (C, Ch_pad)
    w2t = jnp.zeros((ch_pad, C), jnp.float32).at[:Ch, :].set(
        jnp.transpose(w2).astype(jnp.float32))                 # (Ch_pad, C)

    # VMEM budget: double-buffered in + out blocks + (double-buffered) weights.
    blk_bytes = tb * C * HW * itemsize
    w_bytes = 2 * C * ch_pad * 4
    need = 4 * blk_bytes + 4 * w_bytes + (4 << 20)
    vmem_limit = int(min(max(need, 16 << 20), int(vmem_cap * 0.9)))
    # TODO(synk): if a single (1, C, HW) slab exceeds this budget (hits v7x's
    # 64 MiB VMEM first), a two-pass HW-tiled variant (pooling pass + scaling
    # pass over HW tiles) is needed; not required at these shapes.

    kernel = functools.partial(se_block_kernel, inv_hw=1.0 / HW)

    out = pl.pallas_call(
        kernel,
        out_shape=jax.ShapeDtypeStruct(x3.shape, x.dtype),
        grid_spec=pltpu.PrefetchScalarGridSpec(
            num_scalar_prefetch=0,
            grid=(steps,),
            in_specs=[
                pl.BlockSpec(block, lambda b: (b, 0, 0)),
                pl.BlockSpec((C, ch_pad), lambda b: (0, 0)),
                pl.BlockSpec((ch_pad, C), lambda b: (0, 0)),
            ],
            out_specs=pl.BlockSpec(block, lambda b: (b, 0, 0)),
        ),
        compiler_params=pltpu.CompilerParams(
            dimension_semantics=("parallel",),
            vmem_limit_bytes=vmem_limit),
    )(x3, w1t, w2t)

    return out.reshape(B, C, H, W)


def se_block_reference(x, w1, w2):
    # Pure-JAX reference mirroring the PyTorch forward.
    pooled = jnp.mean(x, axis=(2, 3))                          # (B, C)
    y = jnp.maximum(pooled @ w1.T, 0.0)                        # (B, C//r)
    y = jax.nn.sigmoid(y @ w2.T)                               # (B, C)
    return x * y[:, :, None, None]


if __name__ == "__main__":
    # Small shapes consistent with SEBlock(channel=32, reduction=16)
    B, C, H, W = 2, 32, 16, 16
    reduction = 16
    Ch = C // reduction  # 2

    key = jax.random.PRNGKey(0)
    kx, k1, k2 = jax.random.split(key, 3)
    x = jax.random.normal(kx, (B, C, H, W), dtype=jnp.float32)
    # Deterministic synthetic Linear weights (no bias, as in the module).
    w1 = jax.random.normal(k1, (Ch, C), dtype=jnp.float32) * 0.1
    w2 = jax.random.normal(k2, (C, Ch), dtype=jnp.float32) * 0.1

    out = jax.block_until_ready(se_block(x, w1, w2))

    ref = se_block_reference(x, w1, w2)
    assert out.shape == (B, C, H, W)
    assert jnp.allclose(out, ref, atol=1e-5, rtol=1e-5)

    print("KERNEL_OK")
</pallas_src>

<mosaic_0001>
module attributes {stable_mosaic.version = 11 : i64} {
  func.func @se_block_kernel(%arg0: i32, %arg1: memref<2x32x256xf32, #tpu.memory_space<vmem>>, %arg2: memref<32x128xf32, #tpu.memory_space<vmem>>, %arg3: memref<128x32xf32, #tpu.memory_space<vmem>>, %arg4: memref<2x32x256xf32, #tpu.memory_space<vmem>>) attributes {dimension_semantics = [#tpu.dimension_semantics<parallel>], iteration_bounds = array<i64: 1>, scalar_prefetch = 0 : i64, scratch_operands = 0 : i64, tpu.core_type = #tpu.core_type<tc>, window_params = [{transform_indices = @transform_0, window_bounds = array<i64: 2, 32, 256>}, {pipeline_mode = #tpu.pipeline_mode<synchronous>, transform_indices = @transform_1, window_bounds = array<i64: 32, 128>}, {pipeline_mode = #tpu.pipeline_mode<synchronous>, transform_indices = @transform_2, window_bounds = array<i64: 128, 32>}, {transform_indices = @transform_3, window_bounds = array<i64: 2, 32, 256>}]} {
    %c0 = arith.constant 0 : index
    %c0_0 = arith.constant 0 : index
    %c0_1 = arith.constant 0 : index
    %0 = vector.load %arg1[%c0, %c0_0, %c0_1] : memref<2x32x256xf32, #tpu.memory_space<vmem>>, vector<2x32x256xf32>
    %cst = arith.constant dense<0.000000e+00> : vector<2x32xf32>
    %1 = vector.multi_reduction <add>, %0, %cst [2] : vector<2x32x256xf32> to vector<2x32xf32>
    %cst_2 = arith.constant 3.906250e-03 : f32
    %2 = vector.broadcast %cst_2 : f32 to vector<2x32xf32>
    %3 = arith.mulf %1, %2 : vector<2x32xf32>
    %c0_3 = arith.constant 0 : index
    %c0_4 = arith.constant 0 : index
    %4 = vector.load %arg2[%c0_3, %c0_4] : memref<32x128xf32, #tpu.memory_space<vmem>>, vector<32x128xf32>
    %cst_5 = arith.constant dense<0.000000e+00> : vector<2x128xf32>
    %5 = tpu.matmul %3, %4, %cst_5 {dimension_numbers = #tpu.dot_dimension_numbers<[1], [0], [0], [1], [0, 0, 1, 1], [], []>} : vector<2x32xf32>, vector<32x128xf32>, vector<2x128xf32> -> vector<2x128xf32>
    %cst_6 = arith.constant 0.000000e+00 : f32
    %6 = vector.broadcast %cst_6 : f32 to vector<2x128xf32>
    %7 = arith.maximumf %5, %6 : vector<2x128xf32>
    %c0_7 = arith.constant 0 : index
    %c0_8 = arith.constant 0 : index
    %8 = vector.load %arg3[%c0_7, %c0_8] : memref<128x32xf32, #tpu.memory_space<vmem>>, vector<128x32xf32>
    %cst_9 = arith.constant dense<0.000000e+00> : vector<2x32xf32>
    %9 = tpu.matmul %7, %8, %cst_9 {dimension_numbers = #tpu.dot_dimension_numbers<[1], [0], [0], [1], [0, 0, 1, 1], [], []>} : vector<2x128xf32>, vector<128x32xf32>, vector<2x32xf32> -> vector<2x32xf32>
    %10 = arith.negf %9 : vector<2x32xf32>
    %11 = math.exp %10 : vector<2x32xf32>
    %cst_10 = arith.constant 1.000000e+00 : f32
    %12 = vector.broadcast %cst_10 : f32 to vector<2x32xf32>
    %13 = arith.addf %12, %11 : vector<2x32xf32>
    %14 = arith.divf %12, %13 : vector<2x32xf32>
    %15 = vector.shape_cast %14 : vector<2x32xf32> to vector<2x32x1xf32>
    %16 = vector.broadcast %15 : vector<2x32x1xf32> to vector<2x32x256xf32>
    %17 = arith.mulf %0, %16 : vector<2x32x256xf32>
    %c0_11 = arith.constant 0 : index
    %c0_12 = arith.constant 0 : index
    %c0_13 = arith.constant 0 : index
    %18 = vector.load %arg4[%c0_11, %c0_12, %c0_13] : memref<2x32x256xf32, #tpu.memory_space<vmem>>, vector<2x32x256xf32>
    tpu.vector_store %arg4[%c0_11, %c0_12, %c0_13], %17 {strides = array<i32>} : memref<2x32x256xf32, #tpu.memory_space<vmem>>, vector<2x32x256xf32>,
    return
  }
  func.func @transform_0(%arg0: i32) -> (i32, i32, i32) {
    %c0_i32 = arith.constant 0 : i32
    %c0_i32_0 = arith.constant 0 : i32
    %c0_i32_1 = arith.constant 0 : i32
    return %arg0, %c0_i32, %c0_i32_0 : i32, i32, i32
  }
  func.func @transform_1(%arg0: i32) -> (i32, i32) {
    %c0_i32 = arith.constant 0 : i32
    %c0_i32_0 = arith.constant 0 : i32
    %c0_i32_1 = arith.constant 0 : i32
    return %c0_i32, %c0_i32_0 : i32, i32
  }
  func.func @transform_2(%arg0: i32) -> (i32, i32) {
    %c0_i32 = arith.constant 0 : i32
    %c0_i32_0 = arith.constant 0 : i32
    %c0_i32_1 = arith.constant 0 : i32
    return %c0_i32, %c0_i32_0 : i32, i32
  }
  func.func @transform_3(%arg0: i32) -> (i32, i32, i32) {
    %c0_i32 = arith.constant 0 : i32
    %c0_i32_0 = arith.constant 0 : i32
    %c0_i32_1 = arith.constant 0 : i32
    return %arg0, %c0_i32, %c0_i32_0 : i32, i32, i32
  }
}

</mosaic_0001>

<bundles_post_ra>
// kernel: tpu_custom_call.1
= control target key start
LH: loop header
LB: loop body
LE: loop exit
PB: predicated region body
PF: predicated region fallthrough
CT: control target
= control target key end

     0   :  { %s719_s0 = inlined_call_operand.vmem [shape: f32[2,32,256], index: 0, kind: input, shape index: {}]   ;;  %s720_s1 = inlined_call_operand.vmem [shape: f32[32,128], index: 1, kind: input, shape index: {}]   ;;  %s721_s2 = inlined_call_operand.vmem [shape: f32[128,32], index: 2, kind: input, shape index: {}]   ;;  %s722_s3 = inlined_call_operand.hbm [shape: f32[2,32,256], index: 3, kind: output, shape index: {}]  }
   0x1   :  { %v538_v0 = vld [vmem:[%s719_s0 + $0x40] sm:$0xff]  ;;  %v543_v1 = vld [vmem:[%s719_s0 + $0x48] sm:$0xff]  ;;  %v560_v5 = vld [vmem:[%s719_s0 + $0x50] sm:$0xff] }
   0x2   :  { %v548_v2 = vld [vmem:[%s719_s0] sm:$0xff]  ;;  %v43_v3 = vadd.f32 %v543_v1, %v538_v0  ;;  %v555_v4 = vld [vmem:[%s719_s0 + $0x8] sm:$0xff]  ;;  %v565_v6 = vld [vmem:[%s719_s0 + $0x58] sm:$0xff] }
   0x3   :  { %v31_v7 = vadd.f32 %v555_v4, %v548_v2  ;;  %v572_v8 = vld [vmem:[%s719_s0 + $0x10] sm:$0xff]  ;;  %v577_v9 = vld [vmem:[%s719_s0 + $0x18] sm:$0xff]  ;;  %v46_v10 = vadd.f32 %v565_v6, %v560_v5  ;;  %v586_v12 = vld [vmem:[%s719_s0 + $0x60] sm:$0xff] }
   0x4   :  { %44 = vadd.xlane.f32.xlu1 %v43_v3  ;;  %v34_v11 = vadd.f32 %v577_v9, %v572_v8  ;;  %v591_v13 = vld [vmem:[%s719_s0 + $0x68] sm:$0xff]  ;;  %v596_v14 = vld [vmem:[%s719_s0 + $0x20] sm:$0xff] }
   0x5   :  { %32 = vadd.xlane.f32.xlu0 %v31_v7  ;;  %v601_v15 = vld [vmem:[%s719_s0 + $0x28] sm:$0xff] }
   0x6   :  { %8 = vsyncpa [#allocation3], 0  ;;  %v49_v16 = vadd.f32 %v591_v13, %v586_v12  ;;  %v37_v17 = vadd.f32 %v601_v15, %v596_v14  ;;  %v610_v18 = vld [vmem:[%s719_s0 + $0x70] sm:$0xff]  ;;  %v615_v19 = vld [vmem:[%s719_s0 + $0x78] sm:$0xff]  ;;  %v509_v27 = vmov 0.0|0.0   ;;  %vm510_vm0 = vmmov 0  }
   0x7   :  { %v620_v20 = vld [vmem:[%s719_s0 + $0x30] sm:$0xff]  ;;  %v625_v21 = vld [vmem:[%s719_s0 + $0x38] sm:$0xff]  ;;  %v52_v22 = vadd.f32 %v615_v19, %v610_v18  ;;  %v63_v24 = vld [vmem:[%s720_s1] sm:$0xff]  ;;  %445 = vmatprep.subr.bf16.mxu0 %v509_v27  ;;  %451 = vmatprep.subr.bf16.mxu1 %v509_v27  ;;  %v511_v31 = vmov 0.0   ;;  %v75_v53 = vlaneseq  ;;  %vm86_vm1 = vcmask 130112  }
   0x8   :  { %47 = vadd.xlane.f32.xlu1 %v46_v10  ;;  %v40_v23 = vadd.f32 %v625_v21, %v620_v20  ;;  %v64_v25 = vld [vmem:[%s720_s1 + $0x8] sm:$0xff]  ;;  %v65_v28 = vld [vmem:[%s720_s1 + $0x10] sm:$0xff]  ;;  %v66_v29 = vld [vmem:[%s720_s1 + $0x18] sm:$0xff]  ;;  %407 = vmatprep.mubr.msk.f32.mxu0 %vm510_vm0, %v511_v31  ;;  %vm93_vm2 = vcmask 195712   ;;  %vm100_vm3 = vcmask 261312   ;;  %vm121_vm4 = vcmask 1041409  }
   0x9   :  { %35 = vadd.xlane.f32.xlu0 %v34_v11  ;;  %v446_v26 = vpack.c.bf16 %v64_v25, %v63_v24  ;;  %v449_v30 = vpack.c.bf16 %v66_v29, %v65_v28  ;;  %442 = vmatprep.mubr.msk.f32.mxu1 %vm510_vm0, %v511_v31  ;;  %v197_v32 = vld [vmem:[%s721_s2] sm:$0xff]  ;;  %v198_v33 = vld [vmem:[%s721_s2 + $0x8] sm:$0xff]  ;;  %v199_v34 = vld [vmem:[%s721_s2 + $0x10] sm:$0xff]  ;;  %v76_v55 = vand.u32 127, %v75_v53  ;;  %v78_v60 = vshrl.u32 %v75_v53, 7 }
   0xa   :  { %v452_v35 = vpack.c.bf16 %v198_v33, %v197_v32  ;;  %v200_v36 = vld [vmem:[%s721_s2 + $0x18] sm:$0xff]  ;;  %v201_v38 = vld [vmem:[%s721_s2 + $0x20] sm:$0xff]  ;;  %v202_v39 = vld [vmem:[%s721_s2 + $0x28] sm:$0xff]  ;;  %vm123_vm5 = vcmask 261120  }
   0xb   :  { %447 = vmatpush3.bf16.msra.mxu0 %v446_v26  ;;  %v455_v37 = vpack.c.bf16 %v200_v36, %v199_v34  ;;  %v458_v40 = vpack.c.bf16 %v202_v39, %v201_v38  ;;  %v203_v41 = vld [vmem:[%s721_s2 + $0x30] sm:$0xff]  ;;  %v204_v42 = vld [vmem:[%s721_s2 + $0x38] sm:$0xff]  ;;  %v205_v44 = vld [vmem:[%s721_s2 + $0x40] sm:$0xff]  ;;  %v81_v57 = vadd.s32 4294967288, %v76_v55  ;;  %v88_v59 = vadd.s32 4294967280, %v76_v55 }
   0xc   :  { %50 = vadd.xlane.f32.xlu1 %v49_v16  ;;  %448 = vmatprep.subr.bf16.mxu0 %v509_v27  ;;  %v461_v43 = vpack.c.bf16 %v204_v42, %v203_v41  ;;  %v206_v45 = vld [vmem:[%s721_s2 + $0x48] sm:$0xff]  ;;  %v207_v47 = vld [vmem:[%s721_s2 + $0x50] sm:$0xff]  ;;  %v208_v48 = vld [vmem:[%s721_s2 + $0x58] sm:$0xff]  ;;  %v95_v3 = vadd.s32 4294967272, %v76_v55  ;;  %v79_v16 = vsub.s32 %v76_v55, %v78_v60 }
   0xd   :  { %38 = vadd.xlane.f32.xlu0 %v37_v17  ;;  %453 = vmatpush3.bf16.msra.mxu1 %v452_v35  ;;  %v464_v46 = vpack.c.bf16 %v206_v45, %v205_v44  ;;  %v467_v49 = vpack.c.bf16 %v208_v48, %v207_v47  ;;  %v209_v50 = vld [vmem:[%s721_s2 + $0x60] sm:$0xff]  ;;  %v210_v51 = vld [vmem:[%s721_s2 + $0x68] sm:$0xff]  ;;  %v84_v62 = vsub.s32 %v81_v57, %v78_v60  ;;  %v212_v47 = vld [vmem:[%s721_s2 + $0x78] sm:$0xff]  ;;  %v291_v57 = vsub.s32 0, %v78_v60 }
   0xe   :  { %454 = vmatprep.subr.bf16.mxu1 %v509_v27  ;;  %v470_v52 = vpack.c.bf16 %v210_v51, %v209_v50  ;;  %v91_v10 = vsub.s32 %v88_v59, %v78_v60 }
   0xf   :  { %450 = vmatpush3.bf16.msra.mxu0 %v449_v30 }
  0x10   :  { %53 = vadd.xlane.f32.xlu1 %v52_v22 }
  0x11   :  { %41 = vadd.xlane.f32.xlu0 %v40_v23  ;;  %456 = vmatpush3.bf16.msra.mxu1 %v455_v37 }
  0x12   :  { %457 = vmatprep.subr.bf16.mxu1 %v509_v27 }
  0x15   :  { %459 = vmatpush3.bf16.msra.mxu1 %v458_v40 }
  0x16   :  { %460 = vmatprep.subr.bf16.mxu1 %v509_v27 }
  0x19   :  { %462 = vmatpush3.bf16.msra.mxu1 %v461_v43 }
  0x1a   :  { %463 = vmatprep.subr.bf16.mxu1 %v509_v27 }
  0x1d   :  { %465 = vmatpush3.bf16.msra.mxu1 %v464_v46  ;;  %v211_v46 = vld [vmem:[%s721_s2 + $0x70] sm:$0xff]  ;;  %s512_s2 = smov [#allocation2]  }
  0x1e   :  { %466 = vmatprep.subr.bf16.mxu1 %v509_v27  ;;  %v473_v48 = vpack.c.bf16 %v212_v47, %v211_v46  ;;  %s364_s27 = sshll.u32 %s512_s2, 4  ;;  %s365_s27 = int_to_ptr.vmem [resolvable:$true] %s364_s27 }
  0x1f   :  { %s485_s28 = scalar_lea.vmem %s365_s27, 2048  ;;  %p490_p1 = scmp.lt.s32.totalorder %s365_s27, %s365_s27 }
  0x20   :  { %p486_p0 = scmp.ne.s32.totalorder %s365_s27, %s485_s28  ;;  %p491_p2 = scmp.lt.s32.totalorder %s485_s28, %s485_s28 }
  0x21   :  { %468 = vmatpush3.bf16.msra.mxu1 %v467_v49 }
  0x22   :  { %469 = vmatprep.subr.bf16.mxu1 %v509_v27  ;;  %p492_p3 = por %p491_p2, %p490_p1 }
  0x24   :  { %p493_p4 = pnand %p492_p3, %p486_p0 }
  0x25   :  { %471 = vmatpush3.bf16.msra.mxu1 %v470_v52 }
  0x26   :  { %472 = vmatprep.subr.bf16.mxu1 %v509_v27  ;;  %v98_v27 = vsub.s32 %v95_v3, %v78_v60 }
  0x29   :  { %474 = vmatpush3.bf16.msra.mxu1 %v473_v48 }
  0x91   :  { %v45_v54 = vpop.xlane.xlu1 %44 }
  0x92   :  { %v33_v56 = vpop.xlane.xlu0 %32  ;;  %v59_v17 = vmul.f32 0.00390625, %v45_v54 }
  0x93   :  { %v55_v24 = vmul.f32 0.00390625, %v33_v56 }
  0x94   :  { %v105_v31 = vrot.slane %v59_v17, %v79_v16 }
  0x95   :  { %v48_v58 = vpop.xlane.xlu1 %47  ;;  %v80_v35 = vrot.slane %v55_v24, %v79_v16 }
  0x96   :  { %v36_v61 = vpop.xlane.xlu0 %35  ;;  %v60_v63 = vmul.f32 0.00390625, %v48_v58 }
  0x97   :  { %v56_v7 = vmul.f32 0.00390625, %v36_v61  ;;  %v310_v61 = vsub.s32 1, %v78_v60 }
  0x98   :  { %v109_v26 = vrot.slane %v60_v63, %v84_v62 }
  0x99   :  { %v51_v11 = vpop.xlane.xlu1 %50  ;;  %v85_v28 = vrot.slane %v56_v7, %v84_v62 }
  0x9a   :  { %v61_v22 = vmul.f32 0.00390625, %v51_v11  ;;  %v39_v23 = vpop.xlane.xlu0 %38  ;;  %v110_v37 = vsel %vm86_vm1, %v109_v26, %v105_v31 }
  0x9b   :  { %v57_v25 = vmul.f32 0.00390625, %v39_v23  ;;  %v87_v39 = vsel %vm86_vm1, %v85_v28, %v80_v35 }
  0x9c   :  { %v114_v29 = vrot.slane %v61_v22, %v91_v10 }
  0x9d   :  { %v54_v30 = vpop.xlane.xlu1 %53  ;;  %v92_v32 = vrot.slane %v57_v25, %v91_v10 }
  0x9e   :  { %v62_v33 = vmul.f32 0.00390625, %v54_v30  ;;  %v42_v34 = vpop.xlane.xlu0 %41  ;;  %v115_v40 = vsel %vm93_vm2, %v114_v29, %v110_v37 }
  0x9f   :  { %v58_v36 = vmul.f32 0.00390625, %v42_v34  ;;  %v94_v42 = vsel %vm93_vm2, %v92_v32, %v87_v39 }
  0xa0   :  { %v119_v38 = vrot.slane %v62_v33, %v98_v27 }
  0xa1   :  { %v99_v41 = vrot.slane %v58_v36, %v98_v27 }
  0xa2   :  { %v120_v43 = vsel %vm100_vm3, %v119_v38, %v115_v40 }
  0xa3   :  { %v101_v44 = vsel %vm100_vm3, %v99_v41, %v94_v42 }
  0xa4   :  { %v122_v45 = vsel %vm121_vm4, %v120_v43, %v101_v44 }
  0xa5   :  { %408 = vmatmul.mubr.msk.f32.vlgmr.msra.gmra.mrb[0].mxu0 %vm123_vm5, %v122_v45 }
 0x178   :  { %v192_v49 = vpop.f32.mrb[0].mxu0 }
 0x179   :  { %v196_v50 = vmax.f32 %v192_v49, 0.0  ;;  %v409_v51 = vpop.f32.mrb[1].mxu0 }
 0x17b   :  { %443 = vmatmul.mubr.f32.vlgmr.msra.gmra.mrb[0].mxu1 %v196_v50 }
 0x24e   :  { %v279_v52 = vpop.f32.mrb[0].mxu1 }
 0x24f   :  { %v376_v53 = vmul.f32 -1.442695, %v279_v52  ;;  %v444_v54 = vpop.f32.mrb[1].mxu1 }
 0x251   :  { %481 = vpow2.f32 %v376_v53 }
 0x25b   :  { %v482_v55 = vpop.eup %481 }
 0x25c   :  { %v286_v56 = vadd.f32 1.0, %v482_v55 }
 0x25e   :  { %483 = vrcp.f32 %v286_v56 }
 0x268   :  { %v484_v58 = vpop.eup %483 }
 0x269   :  { %v292_v59 = vrot.slane %v484_v58, %v291_v57  ;;  %v311_v62 = vrot.slane %v484_v58, %v310_v61 }
 0x26b   :  { %298 = vbcast.lane.b32.xlu1 %v292_v59, 264  ;;  %294 = vbcast.lane.b32.xlu0 %v292_v59, 256 }
 0x26f   :  { %302 = vbcast.lane.b32.xlu1 %v292_v59, 272  ;;  %313 = vbcast.lane.b32.xlu0 %v311_v62, 256 }
 0x273   :  { %306 = vbcast.lane.b32.xlu1 %v292_v59, 280  ;;  %321 = vbcast.lane.b32.xlu0 %v311_v62, 272 }
 0x277   :  { %317 = vbcast.lane.b32.xlu1 %v311_v62, 264 }
 0x27b   :  { %325 = vbcast.lane.b32.xlu1 %v311_v62, 280 }
 0x2dd   :  { %v299_v63 = vpop.permute.xlu1 %298  ;;  %v295_v3 = vpop.permute.xlu0 %294 }
 0x2de   :  { %v329_v7 = vmul.f32 %v299_v63, %v572_v8  ;;  %v330_v10 = vmul.f32 %v299_v63, %v577_v9  ;;  %v327_v11 = vmul.f32 %v295_v3, %v548_v2  ;;  %v328_v16 = vmul.f32 %v295_v3, %v555_v4 }
 0x2e0   :  { %345 = vst [vmem:[#allocation2 + $0x10] sm:$0xff] %v329_v7  ;;  %346 = vst [vmem:[#allocation2 + $0x18] sm:$0xff] %v330_v10 }
 0x2e1   :  { %343 = vst [vmem:[#allocation2] sm:$0xff] %v327_v11  ;;  %344 = vst [vmem:[#allocation2 + $0x8] sm:$0xff] %v328_v16  ;;  %v303_v60 = vpop.permute.xlu1 %302  ;;  %v314_v17 = vpop.permute.xlu0 %313 }
 0x2e2   :  { %v331_v22 = vmul.f32 %v303_v60, %v596_v14  ;;  %v332_v23 = vmul.f32 %v303_v60, %v601_v15  ;;  %v335_v24 = vmul.f32 %v314_v17, %v538_v0  ;;  %v336_v8 = vmul.f32 %v314_v17, %v543_v1 }
 0x2e4   :  { %347 = vst [vmem:[#allocation2 + $0x20] sm:$0xff] %v331_v22  ;;  %348 = vst [vmem:[#allocation2 + $0x28] sm:$0xff] %v332_v23 }
 0x2e5   :  { %351 = vst [vmem:[#allocation2 + $0x40] sm:$0xff] %v335_v24  ;;  %352 = vst [vmem:[#allocation2 + $0x48] sm:$0xff] %v336_v8  ;;  %v307_v2 = vpop.permute.xlu1 %306  ;;  %v322_v4 = vpop.permute.xlu0 %321 }
 0x2e6   :  { %v333_v9 = vmul.f32 %v307_v2, %v620_v20  ;;  %v334_v25 = vmul.f32 %v307_v2, %v625_v21  ;;  %v339_v26 = vmul.f32 %v322_v4, %v586_v12  ;;  %v340_v14 = vmul.f32 %v322_v4, %v591_v13 }
 0x2e8   :  { %349 = vst [vmem:[#allocation2 + $0x30] sm:$0xff] %v333_v9  ;;  %350 = vst [vmem:[#allocation2 + $0x38] sm:$0xff] %v334_v25 }
 0x2e9   :  { %355 = vst [vmem:[#allocation2 + $0x60] sm:$0xff] %v339_v26  ;;  %356 = vst [vmem:[#allocation2 + $0x68] sm:$0xff] %v340_v14  ;;  %v318_v0 = vpop.permute.xlu1 %317 }
 0x2ea   :  { %v337_v1 = vmul.f32 %v318_v0, %v560_v5  ;;  %v338_v15 = vmul.f32 %v318_v0, %v565_v6 }
 0x2ec   :  { %353 = vst [vmem:[#allocation2 + $0x50] sm:$0xff] %v337_v1  ;;  %354 = vst [vmem:[#allocation2 + $0x58] sm:$0xff] %v338_v15 }
 0x2ed   :  { %v326_v20 = vpop.permute.xlu1 %325 }
 0x2ee   :  { %v341_v21 = vmul.f32 %v326_v20, %v610_v18  ;;  %v342_v12 = vmul.f32 %v326_v20, %v615_v19 }
 0x2f0   :  { %357 = vst [vmem:[#allocation2 + $0x70] sm:$0xff] %v341_v21  ;;  %358 = vst [vmem:[#allocation2 + $0x78] sm:$0xff] %v342_v12 }
 0x2f1   :  { %496 = shalt.err (!%p493_p4)
}
 0x2f2   :  { %s497_s30 = scalar_lea.hbm %s722_s3, 2048 }
 0x2f3   :  { %p498_p5 = scmp.ne.s32.totalorder %s722_s3, %s497_s30  ;;  %p501_p6 = scmp.lt.u32.totalorder %s497_s30, %s722_s3 }
 0x2f5   :  { %p503_p7 = pnand %p501_p6, %p498_p5 }
 0x2f7   :  { %506 = shalt.err (!%p503_p7)
}
 0x2f8   :  { %s513_s8 = smov 256   ;;  %s514_s9 = smov 16  }
 0x2f9   :  { %370 = dma.vmem_to_hbm [thread:$0]  %s365_s27, 2048, %s722_s3, [#allocation3], %s513_s8, %s513_s8, %s514_s9  }
 0x2fa   :  { %507 = dma.done.wait [#allocation3], 2048  }
 0x2fb   :  { %508 = vsyncadd [#allocation3], 4294965248 }
 0x2fc   :  { %374 = vsyncpa [#allocation3], 1 }

</bundles_post_ra>
